<compile_context>
chip_gen: v6e
topology: v6e:2x2x1
jax: 0.10.0
libtpu: 0.0.40
codegen_flags: <defaults>
</compile_context>

<pallas_src>
import functools
from math import sqrt

import jax
import jax.numpy as jnp
from jax import lax
from jax.experimental import pallas as pl
from jax.experimental.pallas import tpu as pltpu


def _round_up(x, m):
    return (x + m - 1) // m * m


# ----------------------------------------------------------------------------
# Kernel: fused 3x3 "SAME" conv (no bias) + per-channel affine + activation
#         for one (batch, row-tile) grid cell, via im2col + a single matmul.
# ----------------------------------------------------------------------------
def _conv3x3_affine_act_kernel(x_ref, top_ref, bot_ref, w_ref, scale_ref,
                               shift_ref, o_ref, xwin_ref, col_ref,
                               *, TH, W, Cin, Cout, act):
    # x_ref:     (1, TH, W, Cin)   row tile of the (unpadded) input
    # top_ref:   (1, 1, W, Cin)    row just above the tile (clamped at t == 0)
    # bot_ref:   (1, 1, W, Cin)    row just below the tile (clamped at t == T-1)
    # w_ref:     (9*Cin, Cout)     im2col weights (tap-major, HWIO flatten)
    # scale_ref: (1, Cout) f32     folded BN scale (or ones)
    # shift_ref: (1, Cout) f32     folded BN shift (or zeros)
    # o_ref:     (1, TH, W, Cout)
    # xwin_ref:  (TH+2, Wp, Cin)   zero-padded window (Wp = roundup(W+2, 8))
    # col_ref:   (TH, W, 9*Cin)    im2col operand slab
    t = pl.program_id(1)
    nt = pl.num_programs(1)
    dt = xwin_ref.dtype

    # Assemble the padded window.  The scratch persists across grid steps, so
    # everything that is read must be (re)written each step -- but only the
    # pad columns and the border halo rows need explicit zeros; there is no
    # full-window zero or duplicate interior copy.
    xwin_ref[:, 0:1, :] = jnp.zeros((TH + 2, 1, Cin), dt)          # left pad col
    xwin_ref[:, W + 1:W + 2, :] = jnp.zeros((TH + 2, 1, Cin), dt)  # right pad col
    xwin_ref[1:TH + 1, 1:W + 1, :] = x_ref[0]                      # interior rows

    @pl.when(t > 0)
    def _():
        xwin_ref[0:1, 1:W + 1, :] = top_ref[0]

    @pl.when(t == 0)
    def _():
        xwin_ref[0:1, 1:W + 1, :] = jnp.zeros((1, W, Cin), dt)

    @pl.when(t < nt - 1)
    def _():
        xwin_ref[TH + 1:TH + 2, 1:W + 1, :] = bot_ref[0]

    @pl.when(t == nt - 1)
    def _():
        xwin_ref[TH + 1:TH + 2, 1:W + 1, :] = jnp.zeros((1, W, Cin), dt)

    # im2col: fold all 9 taps into the contraction dim -> one MXU matmul with
    # K = 9*Cin instead of 9 K=Cin matmuls; removes per-tap result slicing and
    # all accumulator read-modify-write passes.
    for dh in range(3):
        for dw in range(3):
            off = (dh * 3 + dw) * Cin
            col_ref[:, :, off:off + Cin] = xwin_ref[dh:dh + TH, dw:dw + W, :]

    cols = col_ref[...].reshape(TH * W, 9 * Cin)   # free view when W % 8 == 0
    y = jnp.dot(cols, w_ref[...], preferred_element_type=jnp.float32)
    y = y * scale_ref[...] + shift_ref[...]        # folded eval-mode BatchNorm
    if act == "leaky_relu":
        y = jnp.where(y >= 0, y, 0.01 * y)         # PyTorch LeakyReLU default
    o_ref[0] = y.reshape(TH, W, Cout).astype(o_ref.dtype)


# ----------------------------------------------------------------------------
# Per-generation VMEM sizing and row-tile selection.
# ----------------------------------------------------------------------------
def _vmem_budgets():
    """Size VMEM budgets per chip (v5e/v6e: 128 MiB, v7x: 64 MiB)."""
    try:
        cap = int(getattr(pltpu.get_tpu_info(), "vmem_capacity_bytes", 64 << 20))
    except Exception:
        cap = 64 << 20                      # conservative (v7x-safe) fallback
    vmem_limit = min(cap * 3 // 4, cap - (8 << 20))
    tile_budget = vmem_limit * 7 // 10
    return tile_budget, vmem_limit


def _choose_row_tile(N, H, W, Cin, Cout, in_bytes, out_bytes, tile_budget,
                     min_steps=2):
    """Largest row tile dividing H that fits the per-chip VMEM budget.

    Bulk / halo / weight / output blocks are double-buffered by the BlockSpec
    pipeline; xwin + col scratch are single copies.  Prefer a tile that leaves
    at least `min_steps` grid points so both v7x TensorCores get work.
    """
    Wp = _round_up(W + 2, 8)
    best_any, best_ok = 1, None
    for th in range(1, H + 1):
        if H % th:
            continue
        bulk = th * W * Cin * in_bytes
        halo = 2 * W * Cin * in_bytes
        wts = 9 * Cin * Cout * in_bytes + 2 * Cout * 4
        outb = th * W * Cout * out_bytes
        xwin = (th + 2) * Wp * Cin * in_bytes
        col = th * W * 9 * Cin * in_bytes
        if 2 * (bulk + halo + wts + outb) + xwin + col <= tile_budget:
            best_any = th
            if N * (H // th) >= min_steps:
                best_ok = th
    return best_ok if best_ok is not None else best_any


def conv3x3_affine_act(x_nhwc, w_hwio, scale, shift, act, *,
                       out_dtype=None, row_tile=None):
    """Fused 3x3 SAME conv (no bias) + per-channel affine + activation.

    x_nhwc: (N, H, W, Cin); w_hwio: (3, 3, Cin, Cout) -> (N, H, W, Cout).
    """
    N, H, W, Cin = x_nhwc.shape
    Cout = w_hwio.shape[-1]
    if out_dtype is None:
        out_dtype = x_nhwc.dtype
    in_bytes = jnp.dtype(x_nhwc.dtype).itemsize
    out_bytes = jnp.dtype(out_dtype).itemsize

    tile_budget, vmem_limit = _vmem_budgets()
    TH = (row_tile if row_tile is not None else
          _choose_row_tile(N, H, W, Cin, Cout, in_bytes, out_bytes, tile_budget))
    if H % TH != 0:
        raise ValueError(f"row_tile={TH} must divide H={H}")
    T = H // TH
    Wp = _round_up(W + 2, 8)

    w9 = w_hwio.reshape(9 * Cin, Cout).astype(x_nhwc.dtype)
    scale2 = scale.reshape(1, Cout).astype(jnp.float32)
    shift2 = shift.reshape(1, Cout).astype(jnp.float32)

    kernel = functools.partial(_conv3x3_affine_act_kernel,
                               TH=TH, W=W, Cin=Cin, Cout=Cout, act=act)

    cost = pl.CostEstimate(
        flops=2 * N * H * W * 9 * Cin * Cout,
        transcendentals=0,
        bytes_accessed=(N * H * W * Cin * in_bytes          # bulk input
                        + N * T * 2 * W * Cin * in_bytes    # halo re-reads
                        + 9 * Cin * Cout * in_bytes         # weights
                        + N * H * W * Cout * out_bytes))    # output

    return pl.pallas_call(
        kernel,
        out_shape=jax.ShapeDtypeStruct((N, H, W, Cout), out_dtype),
        grid=(N, T),
        in_specs=[
            # bulk row tile
            pl.BlockSpec((1, TH, W, Cin), lambda n, t: (n, t, 0, 0)),
            # single-row halo above (clamped; zeroed in-kernel at t == 0)
            pl.BlockSpec((1, 1, W, Cin),
                         lambda n, t: (n, jnp.maximum(t * TH - 1, 0), 0, 0)),
            # single-row halo below (clamped; zeroed in-kernel at t == T-1)
            pl.BlockSpec((1, 1, W, Cin),
                         lambda n, t: (n, jnp.minimum(t * TH + TH, H - 1), 0, 0)),
            pl.BlockSpec((9 * Cin, Cout), lambda n, t: (0, 0)),
            pl.BlockSpec((1, Cout), lambda n, t: (0, 0)),
            pl.BlockSpec((1, Cout), lambda n, t: (0, 0)),
        ],
        out_specs=pl.BlockSpec((1, TH, W, Cout), lambda n, t: (n, t, 0, 0)),
        scratch_shapes=[pltpu.VMEM((TH + 2, Wp, Cin), x_nhwc.dtype),
                        pltpu.VMEM((TH, W, 9 * Cin), x_nhwc.dtype)],
        compiler_params=pltpu.CompilerParams(
            dimension_semantics=("parallel", "parallel"),
            vmem_limit_bytes=int(vmem_limit)),
        cost_estimate=cost,
    )(x_nhwc, x_nhwc, x_nhwc, w9, scale2, shift2)


# ----------------------------------------------------------------------------
# Parameter construction (mirrors Generator._initialize_weights).
# ----------------------------------------------------------------------------
def init_generator_params(key, channels=1, num_of_layers=10, features=64):
    def conv_w(k, cin, cout):
        # m.weight.data.normal_(0, sqrt(2 / (k*k*out_channels)))
        std = sqrt(2.0 / (3 * 3 * cout))
        return std * jax.random.normal(k, (3, 3, cin, cout), jnp.float32)

    keys = jax.random.split(key, num_of_layers)
    eps = 1e-5
    # eval-mode BN with default running stats (mean=0, var=1), gamma=1, beta=0
    bn_scale = jnp.full((features,), 1.0 / jnp.sqrt(1.0 + eps), jnp.float32)
    bn_shift = jnp.zeros((features,), jnp.float32)

    params = []
    params.append(dict(w=conv_w(keys[0], channels, features),
                       scale=jnp.ones((features,), jnp.float32),
                       shift=jnp.zeros((features,), jnp.float32),
                       act="leaky_relu"))
    for i in range(num_of_layers - 2):
        params.append(dict(w=conv_w(keys[1 + i], features, features),
                           scale=bn_scale, shift=bn_shift,
                           act="leaky_relu"))
    params.append(dict(w=conv_w(keys[num_of_layers - 1], features, 1),
                       scale=jnp.ones((1,), jnp.float32),
                       shift=jnp.zeros((1,), jnp.float32),
                       act="none"))
    return params


def generator_forward(x_nchw, params, *, compute_dtype=jnp.float32,
                      row_tile=None):
    """x_nchw: (N, C, H, W) float32 -> (N, 1, H, W) float32."""
    N, C, H, W = x_nchw.shape
    x = (x_nchw.reshape(N, H, W, 1) if C == 1
         else jnp.transpose(x_nchw, (0, 2, 3, 1)))
    x = x.astype(compute_dtype)

    # TODO(synk): fuse 2-4 consecutive layers into one pallas_call (VMEM-resident
    #             intermediates) to cut inter-layer HBM traffic on this HBM-bound net.
    n_layers = len(params)
    for li, layer in enumerate(params):
        last = li == n_layers - 1
        out_dtype = jnp.float32 if last else compute_dtype
        x = conv3x3_affine_act(x, layer["w"], layer["scale"], layer["shift"],
                               layer["act"], out_dtype=out_dtype,
                               row_tile=row_tile)

    if x.shape[-1] == 1:
        return x.reshape(N, 1, H, W)
    return jnp.transpose(x, (0, 3, 1, 2))


# ----------------------------------------------------------------------------
# Pure-JAX reference (for correctness check only).
# ----------------------------------------------------------------------------
def generator_forward_ref(x_nchw, params, *, compute_dtype=jnp.float32):
    N, C, H, W = x_nchw.shape
    x = (x_nchw.reshape(N, H, W, 1) if C == 1
         else jnp.transpose(x_nchw, (0, 2, 3, 1)))
    x = x.astype(compute_dtype)
    for li, layer in enumerate(params):
        last = li == len(params) - 1
        y = lax.conv_general_dilated(
            x, layer["w"].astype(compute_dtype),
            window_strides=(1, 1), padding="SAME",
            dimension_numbers=("NHWC", "HWIO", "NHWC"),
            preferred_element_type=jnp.float32,
            precision=lax.Precision.HIGHEST)
        y = y * layer["scale"] + layer["shift"]
        if layer["act"] == "leaky_relu":
            y = jnp.where(y >= 0, y, 0.01 * y)
        x = y.astype(jnp.float32 if last else compute_dtype)
    if x.shape[-1] == 1:
        return x.reshape(N, 1, H, W)
    return jnp.transpose(x, (0, 3, 1, 2))


if __name__ == "__main__":
    key = jax.random.PRNGKey(0)
    k_param, k_x = jax.random.split(key)

    # Small config consistent with the module (channels=1, features=64 fixed).
    channels, num_of_layers = 1, 4
    N, H, W = 2, 16, 16

    params = init_generator_params(k_param, channels=channels,
                                   num_of_layers=num_of_layers)
    x = jax.random.normal(k_x, (N, channels, H, W), jnp.float32)

    # f32 path with row_tile=4 so interior tiles and both halo branches are hit.
    out_f32 = jax.block_until_ready(
        generator_forward(x, params, compute_dtype=jnp.float32, row_tile=4))
    ref_f32 = jax.block_until_ready(
        generator_forward_ref(x, params, compute_dtype=jnp.float32))
    assert out_f32.shape == (N, 1, H, W), out_f32.shape
    # Tightened vs v1 (HIGHEST-precision reference); kept modest headroom for
    # MXU f32-pass differences between the conv and the fused matmul.
    assert jnp.allclose(out_f32, ref_f32, atol=5e-3, rtol=5e-3), (
        float(jnp.max(jnp.abs(out_f32 - ref_f32))))

    # bf16 activations/weights (f32 MXU accumulate + f32 epilogue), auto tile.
    out_bf16 = jax.block_until_ready(
        generator_forward(x, params, compute_dtype=jnp.bfloat16))
    ref_bf16 = jax.block_until_ready(
        generator_forward_ref(x, params, compute_dtype=jnp.bfloat16))
    assert out_bf16.shape == (N, 1, H, W), out_bf16.shape
    assert jnp.allclose(out_bf16, ref_bf16, atol=5e-2, rtol=5e-2), (
        float(jnp.max(jnp.abs(out_bf16 - ref_bf16))))

    print("KERNEL_OK")
</pallas_src>

<mosaic_0001>
module attributes {stable_mosaic.version = 11 : i64} {
  func.func @_conv3x3_affine_act_kernel(%arg0: i32, %arg1: i32, %arg2: memref<1x4x16x1xf32, #tpu.memory_space<vmem>>, %arg3: memref<1x1x16x1xf32, #tpu.memory_space<vmem>>, %arg4: memref<1x1x16x1xf32, #tpu.memory_space<vmem>>, %arg5: memref<9x64xf32, #tpu.memory_space<vmem>>, %arg6: memref<1x64xf32, #tpu.memory_space<vmem>>, %arg7: memref<1x64xf32, #tpu.memory_space<vmem>>, %arg8: memref<1x4x16x64xf32, #tpu.memory_space<vmem>>, %arg9: memref<6x24x1xf32, #tpu.memory_space<vmem>>, %arg10: memref<4x16x9xf32, #tpu.memory_space<vmem>>) attributes {dimension_semantics = [#tpu.dimension_semantics<parallel>, #tpu.dimension_semantics<parallel>], iteration_bounds = array<i64: 2, 4>, scalar_prefetch = 0 : i64, scratch_operands = 2 : i64, tpu.core_type = #tpu.core_type<tc>, window_params = [{transform_indices = @transform_0, window_bounds = array<i64: 1, 4, 16, 1>}, {transform_indices = @transform_1, window_bounds = array<i64: 1, 1, 16, 1>}, {transform_indices = @transform_2, window_bounds = array<i64: 1, 1, 16, 1>}, {pipeline_mode = #tpu.pipeline_mode<synchronous>, transform_indices = @transform_3, window_bounds = array<i64: 9, 64>}, {pipeline_mode = #tpu.pipeline_mode<synchronous>, transform_indices = @transform_4, window_bounds = array<i64: 1, 64>}, {pipeline_mode = #tpu.pipeline_mode<synchronous>, transform_indices = @transform_5, window_bounds = array<i64: 1, 64>}, {transform_indices = @transform_6, window_bounds = array<i64: 1, 4, 16, 64>}]} {
    %cst = arith.constant 0.000000e+00 : f32
    %0 = vector.broadcast %cst : f32 to vector<6x1x1xf32>
    %c0 = arith.constant 0 : index
    %c0_0 = arith.constant 0 : index
    %c0_1 = arith.constant 0 : index
    %1 = vector.load %arg9[%c0, %c0_0, %c0_1] : memref<6x24x1xf32, #tpu.memory_space<vmem>>, vector<6x1x1xf32>
    tpu.vector_store %arg9[%c0, %c0_0, %c0_1], %0 {strides = array<i32>} : memref<6x24x1xf32, #tpu.memory_space<vmem>>, vector<6x1x1xf32>,
    %cst_2 = arith.constant 0.000000e+00 : f32
    %2 = vector.broadcast %cst_2 : f32 to vector<6x1x1xf32>
    %c0_3 = arith.constant 0 : index
    %c17 = arith.constant 17 : index
    %c0_4 = arith.constant 0 : index
    %3 = vector.load %arg9[%c0_3, %c17, %c0_4] : memref<6x24x1xf32, #tpu.memory_space<vmem>>, vector<6x1x1xf32>
    tpu.vector_store %arg9[%c0_3, %c17, %c0_4], %2 {strides = array<i32>} : memref<6x24x1xf32, #tpu.memory_space<vmem>>, vector<6x1x1xf32>,
    %c0_5 = arith.constant 0 : index
    %c0_6 = arith.constant 0 : index
    %c0_7 = arith.constant 0 : index
    %c0_8 = arith.constant 0 : index
    %4 = vector.load %arg2[%c0_5, %c0_6, %c0_7, %c0_8] : memref<1x4x16x1xf32, #tpu.memory_space<vmem>>, vector<1x4x16x1xf32>
    %5 = vector.shape_cast %4 : vector<1x4x16x1xf32> to vector<4x16x1xf32>
    %c1 = arith.constant 1 : index
    %c1_9 = arith.constant 1 : index
    %c0_10 = arith.constant 0 : index
    %6 = vector.load %arg9[%c1, %c1_9, %c0_10] : memref<6x24x1xf32, #tpu.memory_space<vmem>>, vector<4x16x1xf32>
    tpu.vector_store %arg9[%c1, %c1_9, %c0_10], %5 {strides = array<i32>} : memref<6x24x1xf32, #tpu.memory_space<vmem>>, vector<4x16x1xf32>,
    %c0_i32 = arith.constant 0 : i32
    %7 = arith.cmpi sgt, %arg1, %c0_i32 : i32
    %8 = arith.extui %7 : i1 to i32
    %c0_i32_11 = arith.constant 0 : i32
    %9 = arith.cmpi ne, %8, %c0_i32_11 : i32
    scf.if %9 {
      %c0_80 = arith.constant 0 : index
      %c0_81 = arith.constant 0 : index
      %c0_82 = arith.constant 0 : index
      %c0_83 = arith.constant 0 : index
      %56 = vector.load %arg3[%c0_80, %c0_81, %c0_82, %c0_83] : memref<1x1x16x1xf32, #tpu.memory_space<vmem>>, vector<1x1x16x1xf32>
      %57 = vector.shape_cast %56 : vector<1x1x16x1xf32> to vector<1x16x1xf32>
      %c0_84 = arith.constant 0 : index
      %c1_85 = arith.constant 1 : index
      %c0_86 = arith.constant 0 : index
      %58 = vector.load %arg9[%c0_84, %c1_85, %c0_86] : memref<6x24x1xf32, #tpu.memory_space<vmem>>, vector<1x16x1xf32>
      tpu.vector_store %arg9[%c0_84, %c1_85, %c0_86], %57 {strides = array<i32>} : memref<6x24x1xf32, #tpu.memory_space<vmem>>, vector<1x16x1xf32>,
    } else {
    }
    %c0_i32_12 = arith.constant 0 : i32
    %10 = arith.cmpi eq, %arg1, %c0_i32_12 : i32
    %11 = arith.extui %10 : i1 to i32
    %c0_i32_13 = arith.constant 0 : i32
    %12 = arith.cmpi ne, %11, %c0_i32_13 : i32
    scf.if %12 {
      %cst_80 = arith.constant 0.000000e+00 : f32
      %56 = vector.broadcast %cst_80 : f32 to vector<1x16x1xf32>
      %c0_81 = arith.constant 0 : index
      %c1_82 = arith.constant 1 : index
      %c0_83 = arith.constant 0 : index
      %57 = vector.load %arg9[%c0_81, %c1_82, %c0_83] : memref<6x24x1xf32, #tpu.memory_space<vmem>>, vector<1x16x1xf32>
      tpu.vector_store %arg9[%c0_81, %c1_82, %c0_83], %56 {strides = array<i32>} : memref<6x24x1xf32, #tpu.memory_space<vmem>>, vector<1x16x1xf32>,
    } else {
    }
    %c3_i32 = arith.constant 3 : i32
    %13 = arith.cmpi slt, %arg1, %c3_i32 : i32
    %14 = arith.extui %13 : i1 to i32
    %c0_i32_14 = arith.constant 0 : i32
    %15 = arith.cmpi ne, %14, %c0_i32_14 : i32
    scf.if %15 {
      %c0_80 = arith.constant 0 : index
      %c0_81 = arith.constant 0 : index
      %c0_82 = arith.constant 0 : index
      %c0_83 = arith.constant 0 : index
      %56 = vector.load %arg4[%c0_80, %c0_81, %c0_82, %c0_83] : memref<1x1x16x1xf32, #tpu.memory_space<vmem>>, vector<1x1x16x1xf32>
      %57 = vector.shape_cast %56 : vector<1x1x16x1xf32> to vector<1x16x1xf32>
      %c5_84 = arith.constant 5 : index
      %c1_85 = arith.constant 1 : index
      %c0_86 = arith.constant 0 : index
      %58 = vector.load %arg9[%c5_84, %c1_85, %c0_86] : memref<6x24x1xf32, #tpu.memory_space<vmem>>, vector<1x16x1xf32>
      tpu.vector_store %arg9[%c5_84, %c1_85, %c0_86], %57 {strides = array<i32>} : memref<6x24x1xf32, #tpu.memory_space<vmem>>, vector<1x16x1xf32>,
    } else {
    }
    %c3_i32_15 = arith.constant 3 : i32
    %16 = arith.cmpi eq, %arg1, %c3_i32_15 : i32
    %17 = arith.extui %16 : i1 to i32
    %c0_i32_16 = arith.constant 0 : i32
    %18 = arith.cmpi ne, %17, %c0_i32_16 : i32
    scf.if %18 {
      %cst_80 = arith.constant 0.000000e+00 : f32
      %56 = vector.broadcast %cst_80 : f32 to vector<1x16x1xf32>
      %c5_81 = arith.constant 5 : index
      %c1_82 = arith.constant 1 : index
      %c0_83 = arith.constant 0 : index
      %57 = vector.load %arg9[%c5_81, %c1_82, %c0_83] : memref<6x24x1xf32, #tpu.memory_space<vmem>>, vector<1x16x1xf32>
      tpu.vector_store %arg9[%c5_81, %c1_82, %c0_83], %56 {strides = array<i32>} : memref<6x24x1xf32, #tpu.memory_space<vmem>>, vector<1x16x1xf32>,
    } else {
    }
    %c0_17 = arith.constant 0 : index
    %c0_18 = arith.constant 0 : index
    %c0_19 = arith.constant 0 : index
    %19 = vector.load %arg9[%c0_17, %c0_18, %c0_19] : memref<6x24x1xf32, #tpu.memory_space<vmem>>, vector<4x16x1xf32>
    %c0_20 = arith.constant 0 : index
    %c0_21 = arith.constant 0 : index
    %c0_22 = arith.constant 0 : index
    %20 = vector.load %arg10[%c0_20, %c0_21, %c0_22] : memref<4x16x9xf32, #tpu.memory_space<vmem>>, vector<4x16x1xf32>
    tpu.vector_store %arg10[%c0_20, %c0_21, %c0_22], %19 {strides = array<i32>} : memref<4x16x9xf32, #tpu.memory_space<vmem>>, vector<4x16x1xf32>,
    %c0_23 = arith.constant 0 : index
    %c1_24 = arith.constant 1 : index
    %c0_25 = arith.constant 0 : index
    %21 = vector.load %arg9[%c0_23, %c1_24, %c0_25] : memref<6x24x1xf32, #tpu.memory_space<vmem>>, vector<4x16x1xf32>
    %c0_26 = arith.constant 0 : index
    %c0_27 = arith.constant 0 : index
    %c1_28 = arith.constant 1 : index
    %22 = vector.load %arg10[%c0_26, %c0_27, %c1_28] : memref<4x16x9xf32, #tpu.memory_space<vmem>>, vector<4x16x1xf32>
    tpu.vector_store %arg10[%c0_26, %c0_27, %c1_28], %21 {strides = array<i32>} : memref<4x16x9xf32, #tpu.memory_space<vmem>>, vector<4x16x1xf32>,
    %c0_29 = arith.constant 0 : index
    %c2 = arith.constant 2 : index
    %c0_30 = arith.constant 0 : index
    %23 = vector.load %arg9[%c0_29, %c2, %c0_30] : memref<6x24x1xf32, #tpu.memory_space<vmem>>, vector<4x16x1xf32>
    %c0_31 = arith.constant 0 : index
    %c0_32 = arith.constant 0 : index
    %c2_33 = arith.constant 2 : index
    %24 = vector.load %arg10[%c0_31, %c0_32, %c2_33] : memref<4x16x9xf32, #tpu.memory_space<vmem>>, vector<4x16x1xf32>
    tpu.vector_store %arg10[%c0_31, %c0_32, %c2_33], %23 {strides = array<i32>} : memref<4x16x9xf32, #tpu.memory_space<vmem>>, vector<4x16x1xf32>,
    %c1_34 = arith.constant 1 : index
    %c0_35 = arith.constant 0 : index
    %c0_36 = arith.constant 0 : index
    %25 = vector.load %arg9[%c1_34, %c0_35, %c0_36] : memref<6x24x1xf32, #tpu.memory_space<vmem>>, vector<4x16x1xf32>
    %c0_37 = arith.constant 0 : index
    %c0_38 = arith.constant 0 : index
    %c3 = arith.constant 3 : index
    %26 = vector.load %arg10[%c0_37, %c0_38, %c3] : memref<4x16x9xf32, #tpu.memory_space<vmem>>, vector<4x16x1xf32>
    tpu.vector_store %arg10[%c0_37, %c0_38, %c3], %25 {strides = array<i32>} : memref<4x16x9xf32, #tpu.memory_space<vmem>>, vector<4x16x1xf32>,
    %c1_39 = arith.constant 1 : index
    %c1_40 = arith.constant 1 : index
    %c0_41 = arith.constant 0 : index
    %27 = vector.load %arg9[%c1_39, %c1_40, %c0_41] : memref<6x24x1xf32, #tpu.memory_space<vmem>>, vector<4x16x1xf32>
    %c0_42 = arith.constant 0 : index
    %c0_43 = arith.constant 0 : index
    %c4 = arith.constant 4 : index
    %28 = vector.load %arg10[%c0_42, %c0_43, %c4] : memref<4x16x9xf32, #tpu.memory_space<vmem>>, vector<4x16x1xf32>
    tpu.vector_store %arg10[%c0_42, %c0_43, %c4], %27 {strides = array<i32>} : memref<4x16x9xf32, #tpu.memory_space<vmem>>, vector<4x16x1xf32>,
    %c1_44 = arith.constant 1 : index
    %c2_45 = arith.constant 2 : index
    %c0_46 = arith.constant 0 : index
    %29 = vector.load %arg9[%c1_44, %c2_45, %c0_46] : memref<6x24x1xf32, #tpu.memory_space<vmem>>, vector<4x16x1xf32>
    %c0_47 = arith.constant 0 : index
    %c0_48 = arith.constant 0 : index
    %c5 = arith.constant 5 : index
    %30 = vector.load %arg10[%c0_47, %c0_48, %c5] : memref<4x16x9xf32, #tpu.memory_space<vmem>>, vector<4x16x1xf32>
    tpu.vector_store %arg10[%c0_47, %c0_48, %c5], %29 {strides = array<i32>} : memref<4x16x9xf32, #tpu.memory_space<vmem>>, vector<4x16x1xf32>,
    %c2_49 = arith.constant 2 : index
    %c0_50 = arith.constant 0 : index
    %c0_51 = arith.constant 0 : index
    %31 = vector.load %arg9[%c2_49, %c0_50, %c0_51] : memref<6x24x1xf32, #tpu.memory_space<vmem>>, vector<4x16x1xf32>
    %c0_52 = arith.constant 0 : index
    %c0_53 = arith.constant 0 : index
    %c6 = arith.constant 6 : index
    %32 = vector.load %arg10[%c0_52, %c0_53, %c6] : memref<4x16x9xf32, #tpu.memory_space<vmem>>, vector<4x16x1xf32>
    tpu.vector_store %arg10[%c0_52, %c0_53, %c6], %31 {strides = array<i32>} : memref<4x16x9xf32, #tpu.memory_space<vmem>>, vector<4x16x1xf32>,
    %c2_54 = arith.constant 2 : index
    %c1_55 = arith.constant 1 : index
    %c0_56 = arith.constant 0 : index
    %33 = vector.load %arg9[%c2_54, %c1_55, %c0_56] : memref<6x24x1xf32, #tpu.memory_space<vmem>>, vector<4x16x1xf32>
    %c0_57 = arith.constant 0 : index
    %c0_58 = arith.constant 0 : index
    %c7 = arith.constant 7 : index
    %34 = vector.load %arg10[%c0_57, %c0_58, %c7] : memref<4x16x9xf32, #tpu.memory_space<vmem>>, vector<4x16x1xf32>
    tpu.vector_store %arg10[%c0_57, %c0_58, %c7], %33 {strides = array<i32>} : memref<4x16x9xf32, #tpu.memory_space<vmem>>, vector<4x16x1xf32>,
    %c2_59 = arith.constant 2 : index
    %c2_60 = arith.constant 2 : index
    %c0_61 = arith.constant 0 : index
    %35 = vector.load %arg9[%c2_59, %c2_60, %c0_61] : memref<6x24x1xf32, #tpu.memory_space<vmem>>, vector<4x16x1xf32>
    %c0_62 = arith.constant 0 : index
    %c0_63 = arith.constant 0 : index
    %c8 = arith.constant 8 : index
    %36 = vector.load %arg10[%c0_62, %c0_63, %c8] : memref<4x16x9xf32, #tpu.memory_space<vmem>>, vector<4x16x1xf32>
    tpu.vector_store %arg10[%c0_62, %c0_63, %c8], %35 {strides = array<i32>} : memref<4x16x9xf32, #tpu.memory_space<vmem>>, vector<4x16x1xf32>,
    %c0_64 = arith.constant 0 : index
    %c0_65 = arith.constant 0 : index
    %c0_66 = arith.constant 0 : index
    %37 = vector.load %arg10[%c0_64, %c0_65, %c0_66] : memref<4x16x9xf32, #tpu.memory_space<vmem>>, vector<4x16x9xf32>
    %38 = vector.shape_cast %37 : vector<4x16x9xf32> to vector<64x9xf32>
    %c0_67 = arith.constant 0 : index
    %c0_68 = arith.constant 0 : index
    %39 = vector.load %arg5[%c0_67, %c0_68] : memref<9x64xf32, #tpu.memory_space<vmem>>, vector<9x64xf32>
    %cst_69 = arith.constant dense<0.000000e+00> : vector<64x64xf32>
    %40 = tpu.matmul %38, %39, %cst_69 {dimension_numbers = #tpu.dot_dimension_numbers<[1], [0], [0], [1], [0, 0, 1, 1], [], []>} : vector<64x9xf32>, vector<9x64xf32>, vector<64x64xf32> -> vector<64x64xf32>
    %c0_70 = arith.constant 0 : index
    %c0_71 = arith.constant 0 : index
    %41 = vector.load %arg6[%c0_70, %c0_71] : memref<1x64xf32, #tpu.memory_space<vmem>>, vector<1x64xf32>
    %42 = vector.broadcast %41 : vector<1x64xf32> to vector<64x64xf32>
    %43 = arith.mulf %40, %42 : vector<64x64xf32>
    %c0_72 = arith.constant 0 : index
    %c0_73 = arith.constant 0 : index
    %44 = vector.load %arg7[%c0_72, %c0_73] : memref<1x64xf32, #tpu.memory_space<vmem>>, vector<1x64xf32>
    %45 = vector.broadcast %44 : vector<1x64xf32> to vector<64x64xf32>
    %46 = arith.addf %43, %45 : vector<64x64xf32>
    %cst_74 = arith.constant 0.000000e+00 : f32
    %47 = vector.broadcast %cst_74 : f32 to vector<64x64xf32>
    %48 = arith.cmpf oge, %46, %47 : vector<64x64xf32>
    %cst_75 = arith.constant 0.00999999977 : f32
    %49 = vector.broadcast %cst_75 : f32 to vector<64x64xf32>
    %50 = arith.mulf %49, %46 : vector<64x64xf32>
    %51 = arith.select %48, %46, %50 : vector<64x64xi1>, vector<64x64xf32>
    %52 = vector.shape_cast %51 : vector<64x64xf32> to vector<4x16x64xf32>
    %c0_76 = arith.constant 0 : index
    %c0_77 = arith.constant 0 : index
    %c0_78 = arith.constant 0 : index
    %c0_79 = arith.constant 0 : index
    %53 = vector.load %arg8[%c0_76, %c0_77, %c0_78, %c0_79] : memref<1x4x16x64xf32, #tpu.memory_space<vmem>>, vector<1x4x16x64xf32>
    %54 = vector.shape_cast %53 : vector<1x4x16x64xf32> to vector<4x16x64xf32>
    %55 = vector.shape_cast %52 : vector<4x16x64xf32> to vector<1x4x16x64xf32>
    tpu.vector_store %arg8[%c0_76, %c0_77, %c0_78, %c0_79], %55 {strides = array<i32>} : memref<1x4x16x64xf32, #tpu.memory_space<vmem>>, vector<1x4x16x64xf32>,
    return
  }
  func.func @transform_0(%arg0: i32, %arg1: i32) -> (i32, i32, i32, i32) {
    %c0_i32 = arith.constant 0 : i32
    %c0_i32_0 = arith.constant 0 : i32
    %c0_i32_1 = arith.constant 0 : i32
    return %arg0, %arg1, %c0_i32, %c0_i32_0 : i32, i32, i32, i32
  }
  func.func @transform_1(%arg0: i32, %arg1: i32) -> (i32, i32, i32, i32) {
    %c4_i32 = arith.constant 4 : i32
    %0 = arith.muli %arg1, %c4_i32 : i32
    %c1_i32 = arith.constant 1 : i32
    %1 = arith.subi %0, %c1_i32 : i32
    %c0_i32 = arith.constant 0 : i32
    %2 = arith.maxsi %1, %c0_i32 : i32
    %c0_i32_0 = arith.constant 0 : i32
    %c0_i32_1 = arith.constant 0 : i32
    %c0_i32_2 = arith.constant 0 : i32
    return %arg0, %2, %c0_i32_0, %c0_i32_1 : i32, i32, i32, i32
  }
  func.func @transform_2(%arg0: i32, %arg1: i32) -> (i32, i32, i32, i32) {
    %c4_i32 = arith.constant 4 : i32
    %0 = arith.muli %arg1, %c4_i32 : i32
    %c4_i32_0 = arith.constant 4 : i32
    %1 = arith.addi %0, %c4_i32_0 : i32
    %c15_i32 = arith.constant 15 : i32
    %2 = arith.minsi %1, %c15_i32 : i32
    %c0_i32 = arith.constant 0 : i32
    %c0_i32_1 = arith.constant 0 : i32
    %c0_i32_2 = arith.constant 0 : i32
    return %arg0, %2, %c0_i32, %c0_i32_1 : i32, i32, i32, i32
  }
  func.func @transform_3(%arg0: i32, %arg1: i32) -> (i32, i32) {
    %c0_i32 = arith.constant 0 : i32
    %c0_i32_0 = arith.constant 0 : i32
    %c0_i32_1 = arith.constant 0 : i32
    return %c0_i32, %c0_i32_0 : i32, i32
  }
  func.func @transform_4(%arg0: i32, %arg1: i32) -> (i32, i32) {
    %c0_i32 = arith.constant 0 : i32
    %c0_i32_0 = arith.constant 0 : i32
    %c0_i32_1 = arith.constant 0 : i32
    return %c0_i32, %c0_i32_0 : i32, i32
  }
  func.func @transform_5(%arg0: i32, %arg1: i32) -> (i32, i32) {
    %c0_i32 = arith.constant 0 : i32
    %c0_i32_0 = arith.constant 0 : i32
    %c0_i32_1 = arith.constant 0 : i32
    return %c0_i32, %c0_i32_0 : i32, i32
  }
  func.func @transform_6(%arg0: i32, %arg1: i32) -> (i32, i32, i32, i32) {
    %c0_i32 = arith.constant 0 : i32
    %c0_i32_0 = arith.constant 0 : i32
    %c0_i32_1 = arith.constant 0 : i32
    return %arg0, %arg1, %c0_i32, %c0_i32_0 : i32, i32, i32, i32
  }
}

</mosaic_0001>

<bundles_post_ra>
// kernel: tpu_custom_call.1
= control target key start
LH: loop header
LB: loop body
LE: loop exit
PB: predicated region body
PF: predicated region fallthrough
CT: control target
= control target key end

     0   :  { %s1959_s0 = inlined_call_operand.vmem [shape: f32[2,16,16,1], index: 0, kind: input, shape index: {}]   ;;  %s1960_s1 = inlined_call_operand.vmem [shape: f32[2,16,16,1], index: 1, kind: input, shape index: {}]   ;;  %s1961_s2 = inlined_call_operand.vmem [shape: f32[2,16,16,1], index: 2, kind: input, shape index: {}]   ;;  %s1962_s3 = inlined_call_operand.vmem [shape: f32[9,64], index: 3, kind: input, shape index: {}]   ;;  %s1963_s4 = inlined_call_operand.vmem [shape: f32[1,64], index: 4, kind: input, shape index: {}]   ;;  %s1964_s5 = inlined_call_operand.vmem [shape: f32[1,64], index: 5, kind: input, shape index: {}]   ;;  %s1965_s6 = inlined_call_operand.hbm [shape: f32[2,16,16,64], index: 6, kind: output, shape index: {}]  }
   0x1   :  { %1971 = sst [smem:[#allocation12_spill]] %s1959_s0 }
   0x2   :  { %11 = vsyncpa [#allocation5], 0 }
   0x3   :  { %13 = vsyncpa [#allocation5 + $0x1], 0  ;;  %s1542_s21 = smov 0   ;;  %s1544_s22 = smov 0  }
   0x4   :  { %s1546_s23 = smov 0   ;;  %s1548_s24 = smov 0  }
   0x5   :  { %s1550_s25 = smov 0   ;;  %s1552_s26 = smov 0  }
   0x6   :  { %s1554_s27 = smov 0   ;;  %s1556_s28 = smov 0  }
   0x7 LB: > { %1972 = sst [smem:[#allocation7_spill]] %s1484_s26  ;;  %s1229_s29 = sadd.s32 4294967295, %s1492_s28   ;;  %s1492_s28 = sphi %s1556_s28, %s19_s28   ;;  %s1488_s27 = sphi %s1554_s27, %s1986_s27   ;;  %s1484_s26 = sphi %s1552_s26, %s1985_s26   ;;  %s1480_s25 = sphi %s1550_s25, %s1984_s25   ;;  %s1476_s24 = sphi %s1548_s24, %s1983_s24   ;;  %s1472_s23 = sphi %s1546_s23, %s1989_s23   ;;  %s1468_s22 = sphi %s1544_s22, %s1988_s22   ;;  %s1464_s21 = sphi %s1542_s21, %s1987_s21  }
   0x8   : > { %1973 = sst [smem:[#allocation8_spill]] %s1488_s27  ;;  %s1230_s30 = sadd.s32 4294967294, %s1492_s28  }
   0x9   : > { %s28_s7 = sadd.s32 1, %s1484_s26  ;;  %s31_s8 = sadd.s32 1, %s1488_s27 }
   0xa   : > { %p29_p0 = scmp.ge.s32.totalorder %s28_s7, 4  ;;  %p213_p1 = scmp.ne.s32.totalorder %s1472_s23, %s1468_s22 }
   0xb   : > { %p214_p2 = scmp.eq.s32.totalorder %s1229_s29, 7  ;;  %p219_p5 = scmp.ne.s32.totalorder %s1468_s22, %s1464_s21 }
   0xc   : > { %s1991_s7 = smov (%p29_p0, %s28_s7), 0  ;;  %s1993_s8 = smov (!%p29_p0, %s31_s8), %s1488_s27 }
   0xd   : > { %1974 = sst [smem:[#allocation9_spill]] %s1991_s7  ;;  %s199_s9 = ssub.s32 %s1484_s26, %s1991_s7 }
   0xe   : > { %p1593_p3 = por %p214_p2, %p213_p1  ;;  %p33_p4 = scmp.ge.s32.totalorder %s1993_s8, 2 }
   0xf   : > { %p220_p6 = scmp.eq.s32.totalorder %s1230_s30, 7  ;;  %p1239_p7 = scmp.ge.s32.totalorder %s1492_s28, 1 }
  0x10   : > { %s1995_s8 = smov (%p33_p4, %s1993_s8), 0  ;;  %p301_p9 = scmp.lt.s32.totalorder %s1492_s28, 9 }
  0x11   : > { %1976 = sst [smem:[#allocation10_spill]] %s1995_s8  ;;  %p1602_p8 = por %p220_p6, %p219_p5 }
  0x12   : > { %s198_s12 = ssub.s32 %s1488_s27, %s1995_s8  ;;  %s203_s13 = sadd.s32 1, %s1472_s23 }
  0x13   : > { %s200_s14 = sor.u32 %s199_s9, %s198_s12  ;;  %p302_p10 = pnand %p1239_p7, %p301_p9 }
  0x14   : > { %p201_p11 = scmp.eq.s32.totalorder %s200_s14, 0  ;;  %s1966_s16 = sand.u32 (!%p302_p10), 1, %s1468_s22  }
  0x15   : > { %305 = sbr.rel (%p302_p10) target bundleno = 540 (0x21c), region = 44  ;;  %s1615_s17 = sshll.u32 (!%p302_p10), %s1476_s24, 2 }
  0x16   : > { %s1611_s15 = scalar_select %p201_p11, %s1472_s23, %s203_s13  }
  0x17   : > { %s1619_s18 = sshll.u32 (!%p302_p10), %s1966_s16, 6  ;;  %p363_p12 = scmp.lt.s32.totalorder (!%p302_p10), %s1480_s25, 1 }
  0x18   : > { %1978 = sst [smem:[#allocation11_spill]] %s1611_s15  ;;  %p365_p13 = scmp.lt.s32.totalorder (!%p302_p10), %s1615_s17, 15 }
  0x19   : > { %s1246_s30 = sadd.s32 (!%p302_p10), 4294967295, %s1615_s17  ;;  %s391_s14 = sadd.s32 (!%p302_p10), 4, %s1615_s17 }
  0x1a   : > { %vm408_vm0 = vcmask 0   ;;  %v1494_v0 = vmov 0.0   ;;  %s364_s19 = scalar_select %p363_p12, %s1480_s25, 1  ;;  %vm430_vm1 = vcmask 7168  }
  0x1b   : > { %409 = vst.msk [vmem:[#allocation2] sm:$0x1] %vm408_vm0, %v1494_v0  ;;  %410 = vst.msk [vmem:[#allocation2 + $0x18] sm:$0x1] %vm408_vm0, %v1494_v0  ;;  %s366_s20 = scalar_select %p365_p13, %s1615_s17, 15 }
  0x1c   : > { %411 = vst.msk [vmem:[#allocation2 + $0x30] sm:$0x1] %vm408_vm0, %v1494_v0  ;;  %412 = vst.msk [vmem:[#allocation2 + $0x48] sm:$0x1] %vm408_vm0, %v1494_v0  ;;  %s1625_s29 = sshll.u32 %s364_s19, 5  ;;  %p375_p0 = scmp.gt.s32.totalorder %s1246_s30, 0 }
  0x1d   : > { %413 = vst.msk [vmem:[#allocation2 + $0x60] sm:$0x1] %vm408_vm0, %v1494_v0  ;;  %414 = vst.msk [vmem:[#allocation2 + $0x78] sm:$0x1] %vm408_vm0, %v1494_v0  ;;  %s1242_s9 = sshll.u32 %s366_s20, 1  ;;  %p1247_p1 = scmp.lt.s32.totalorder %s1246_s30, 15 }
  0x1e   : > { %415 = vst.msk [vmem:[#allocation2 + $0x11] sm:$0x1] %vm408_vm0, %v1494_v0  ;;  %416 = vst.msk [vmem:[#allocation2 + $0x29] sm:$0x1] %vm408_vm0, %v1494_v0  ;;  %s369_s12 = sadd.s32 %s1625_s29, %s1242_s9  ;;  %s1979_s0 = sld [smem:[#allocation12_spill]] }
  0x1f   : > { %417 = vst.msk [vmem:[#allocation2 + $0x41] sm:$0x1] %vm408_vm0, %v1494_v0  ;;  %418 = vst.msk [vmem:[#allocation2 + $0x59] sm:$0x1] %vm408_vm0, %v1494_v0  ;;  %s1244_s13 = sshll.u32 %s369_s12, 3  ;;  %p1633_p2 = scmp.lt.s32.totalorder %s391_s14, 15 }
  0x20   : > { %419 = vst.msk [vmem:[#allocation2 + $0x71] sm:$0x1] %vm408_vm0, %v1494_v0  ;;  %420 = vst.msk [vmem:[#allocation2 + $0x89] sm:$0x1] %vm408_vm0, %v1494_v0  ;;  %s376_s19 = scalar_select %p375_p0, %s1246_s30, 0 }
  0x21   : > { %s1997_s14 = smov (!%p1633_p2, %s391_s14), 15  ;;  %s1659_s27 = scalar_lea.vmem [#allocation4], %s1619_s18 }
  0x22   : > { %s1999_s19 = smov (!%p1247_p1, %s376_s19), 15  ;;  %s2001_s14 = smov (!%p1633_p2, %s1997_s14), 15 }
  0x23   : > { %s1252_s8 = sshll.u32 %s1999_s19, 1  ;;  %s1259_s17 = sshll.u32 %s2001_s14, 1 }
  0x24   : > { %s371_s7 = scalar_lea.vmem %s1979_s0, %s1244_s13  ;;  %s383_s16 = sadd.s32 %s1252_s8, %s1625_s29 }
  0x25   : > { %v421_v1 = vld [vmem:[%s371_s7] sm:$0xff]  ;;  %v422_v2 = vld [vmem:[%s371_s7 + $0x8] sm:$0xff]  ;;  %v423_v3 = vld [vmem:[%s371_s7 + $0x10] sm:$0xff]  ;;  %s1254_s20 = sshll.u32 %s383_s16, 3  ;;  %s400_s30 = sadd.s32 %s1259_s17, %s1625_s29 }
  0x26   : > { %431 = vst.msk [vmem:[#allocation2 + $0x19] sm:$0xff] %vm430_vm1, %v421_v1  ;;  %432 = vst.msk [vmem:[#allocation2 + $0x21] sm:$0xff] %vm430_vm1, %v422_v2  ;;  %v424_v4 = vld [vmem:[%s371_s7 + $0x18] sm:$0xff]  ;;  %v425_v5 = vld [vmem:[%s371_s7 + $0x20] sm:$0xff]  ;;  %s385_s13 = scalar_lea.vmem %s1960_s1, %s1254_s20  ;;  %s1261_s0 = sshll.u32 %s400_s30, 3 }
  0x27   : > { %433 = vst.msk [vmem:[#allocation2 + $0x31] sm:$0xff] %vm430_vm1, %v423_v3  ;;  %v426_v6 = vld [vmem:[%s371_s7 + $0x28] sm:$0xff]  ;;  %434 = vst.msk [vmem:[#allocation2 + $0x39] sm:$0xff] %vm430_vm1, %v424_v4  ;;  %v427_v7 = vld [vmem:[%s371_s7 + $0x30] sm:$0xff]  ;;  %p1262_p4 = scmp.le.s32.totalorder %s1476_s24, 0 }
  0x28   : > { %435 = vst.msk [vmem:[#allocation2 + $0x49] sm:$0xff] %vm430_vm1, %v425_v5  ;;  %436 = vst.msk [vmem:[#allocation2 + $0x51] sm:$0xff] %vm430_vm1, %v426_v6  ;;  %v428_v8 = vld [vmem:[%s371_s7 + $0x38] sm:$0xff]  ;;  %s402_s7 = scalar_lea.vmem %s1961_s2, %s1261_s0 }
  0x29   : > { %437 = vst.msk [vmem:[#allocation2 + $0x61] sm:$0xff] %vm430_vm1, %v427_v7  ;;  %438 = vst.msk [vmem:[#allocation2 + $0x69] sm:$0xff] %vm430_vm1, %v428_v8  ;;  %442 = sbr.rel (%p1262_p4) target bundleno = 48 (0x30), region = 48 }
  0x2e   : > { %v443_v9 = vld [vmem:[%s385_s13] sm:$0xff]  ;;  %v444_v10 = vld [vmem:[%s385_s13 + $0x8] sm:$0xff] }
  0x2f   : > { %445 = vst.msk [vmem:[#allocation2 + $0x1] sm:$0xff] %vm430_vm1, %v443_v9  ;;  %446 = vst.msk [vmem:[#allocation2 + $0x9] sm:$0xff] %vm430_vm1, %v444_v10 }
  0x30 PF: > { %p1263_p5 = scmp.ne.s32.totalorder %s1476_s24, 0 }
  0x32   : > { %450 = sbr.rel (%p1263_p5) target bundleno = 57 (0x39), region = 52 }
  0x37   : > { %v1495_v11 = vmov 0.0  }
  0x38   : > { %451 = vst.msk [vmem:[#allocation2 + $0x1] sm:$0xff] %vm430_vm1, %v1495_v11  ;;  %452 = vst.msk [vmem:[#allocation2 + $0x9] sm:$0xff] %vm430_vm1, %v1495_v11 }
  0x39 PF: > { %p1264_p6 = scmp.ge.s32.totalorder %s1476_s24, 3 }
  0x3b   : > { %456 = sbr.rel (%p1264_p6) target bundleno = 66 (0x42), region = 56 }
  0x40   : > { %v457_v12 = vld [vmem:[%s402_s7] sm:$0xff]  ;;  %v458_v13 = vld [vmem:[%s402_s7 + $0x8] sm:$0xff] }
  0x41   : > { %460 = vst.msk [vmem:[#allocation2 + $0x79] sm:$0xff] %vm430_vm1, %v457_v12  ;;  %461 = vst.msk [vmem:[#allocation2 + $0x81] sm:$0xff] %vm430_vm1, %v458_v13 }
  0x42 PF: > { %p1265_p7 = scmp.ne.s32.totalorder %s1476_s24, 3 }
  0x44   : > { %465 = sbr.rel (%p1265_p7) target bundleno = 75 (0x4b), region = 60 }
  0x49   : > { %v1496_v14 = vmov 0.0  }
  0x4a   : > { %467 = vst.msk [vmem:[#allocation2 + $0x79] sm:$0xff] %vm430_vm1, %v1496_v14  ;;  %468 = vst.msk [vmem:[#allocation2 + $0x81] sm:$0xff] %vm430_vm1, %v1496_v14 }
  0x4b PF: > { %v486_v15 = vld [vmem:[#allocation2 + $0x9] sm:$0xff]  ;;  %v485_v16 = vld [vmem:[#allocation2 + $0x1] sm:$0xff]  ;;  %s1497_s0 = smov 1   ;;  %v1675_v17 = vld [vmem:[#allocation2 + $0x39] sm:$0xff]  ;;  %s1498_s26 = smov 2   ;;  %vm913_vm2 = vcmask 1040384  }
  0x4c   : > { %503 = vrot.lane.b32.xlu1 %v486_v15, %s1497_s0  ;;  %501 = vrot.lane.b32.xlu0 %v485_v16, %s1497_s0  ;;  %v1677_v18 = vld [vmem:[#allocation2 + $0x31] sm:$0xff]  ;;  %v1679_v19 = vld [vmem:[#allocation2 + $0x48] sm:$0xff]  ;;  %v584_v22 = vld [vmem:[#allocation2 + $0x20] sm:$0xff]  ;;  %s1499_s15 = smov 3   ;;  %s1500_s18 = smov 4   ;;  %vm525_vm3 = vcmask 15368  }
  0x4d   : > { %v583_v20 = vld [vmem:[#allocation2 + $0x18] sm:$0xff]  ;;  %v1681_v21 = vld [vmem:[#allocation2 + $0x50] sm:$0xff]  ;;  %483 = vst.msk [vmem:[#allocation3 + $0x30] sm:$0xff] %vm430_vm1, %v1679_v19  ;;  %480 = vst.msk [vmem:[#allocation3 + $0x18] sm:$0xff] %vm430_vm1, %v584_v22  ;;  %s1501_s29 = smov 5   ;;  %s1502_s14 = smov 6  }
  0x4e   : > { %479 = vst.msk [vmem:[#allocation3 + $0x10] sm:$0xff] %vm430_vm1, %v583_v20  ;;  %484 = vst.msk [vmem:[#allocation3 + $0x38] sm:$0xff] %vm430_vm1, %v1681_v21  ;;  %v1693_v23 = vld [vmem:[#allocation2 + $0x32] sm:$0xff]  ;;  %v534_v24 = vld [vmem:[#allocation2 + $0x2] sm:$0xff]  ;;  %s1503_s19 = smov 7   ;;  %s1504_s8 = smov 8  }
  0x4f   : > { %v731_v25 = vld [vmem:[#allocation2 + $0x30] sm:$0xff]  ;;  %v732_v26 = vld [vmem:[#allocation2 + $0x38] sm:$0xff]  ;;  %v470_v29 = vld [vmem:[#allocation2 + $0x8] sm:$0xff]  ;;  %vm574_vm4 = vcmask 23568   ;;  %vm623_vm5 = vcmask 31768   ;;  %vm672_vm6 = vcmask 39968  }
  0x50   : > { %511 = vrot.lane.b32.xlu1 %v1675_v17, %s1497_s0  ;;  %509 = vrot.lane.b32.xlu0 %v1677_v18, %s1497_s0  ;;  %482 = vst.msk [vmem:[#allocation3 + $0x28] sm:$0xff] %vm430_vm1, %v732_v26  ;;  %481 = vst.msk [vmem:[#allocation3 + $0x20] sm:$0xff] %vm430_vm1, %v731_v25  ;;  %v1700_v27 = vld [vmem:[#allocation2 + $0x3a] sm:$0xff]  ;;  %v535_v28 = vld [vmem:[#allocation2 + $0xa] sm:$0xff]  ;;  %vm721_vm7 = vcmask 48168   ;;  %vm771_vm8 = vcmask 56368  }
  0x51   : > { %v469_v30 = vld [vmem:[#allocation2] sm:$0xff]  ;;  %478 = vst.msk [vmem:[#allocation3 + $0x8] sm:$0xff] %vm430_vm1, %v470_v29  ;;  %v1713_v31 = vld [vmem:[#allocation2 + $0x49] sm:$0xff]  ;;  %v1721_v33 = vld [vmem:[#allocation2 + $0x51] sm:$0xff]  ;;  %vm820_vm9 = vcmask 64568   ;;  %vm869_vm10 = vcmask 72768  }
  0x52   : > { %477 = vst.msk [vmem:[#allocation3] sm:$0xff] %vm430_vm1, %v469_v30  ;;  %v632_v32 = vld [vmem:[#allocation2 + $0x19] sm:$0xff]  ;;  %v633_v34 = vld [vmem:[#allocation2 + $0x21] sm:$0xff]  ;;  %v1726_v35 = vld [vmem:[#allocation2 + $0x4a] sm:$0xff]  ;;  %vm888_vm11 = vcmask 72704   ;;  %vm1076_vm12 = vcmask 523264  }
  0x53   : > { %v681_v36 = vld [vmem:[#allocation2 + $0x1a] sm:$0xff]  ;;  %v1737_v37 = vld [vmem:[#allocation2 + $0x52] sm:$0xff]  ;;  %v682_v38 = vld [vmem:[#allocation2 + $0x22] sm:$0xff]  ;;  %s1505_s20 = smov [#allocation4]  }
  0x54   : > { %558 = vrot.lane.b32.xlu1 %v1693_v23, %s1498_s26  ;;  %550 = vrot.lane.b32.xlu0 %v534_v24, %s1498_s26  ;;  %v735_v39 = vld [vmem:[#allocation2 + $0x60] sm:$0xff]  ;;  %v736_v40 = vld [vmem:[#allocation2 + $0x68] sm:$0xff]  ;;  %v737_v47 = vld [vmem:[#allocation2 + $0x78] sm:$0xff]  ;;  %s1404_s30 = sshll.u32 %s1505_s20, 4  ;;  %s1405_s30 = int_to_ptr.vmem [resolvable:$false] %s1404_s30 }
  0x55   : > { %v784_v41 = vld [vmem:[#allocation2 + $0x61] sm:$0xff]  ;;  %v785_v42 = vld [vmem:[#allocation2 + $0x69] sm:$0xff]  ;;  %v786_v49 = vld [vmem:[#allocation2 + $0x79] sm:$0xff]  ;;  %s1406_s9 = scalar_lea.vmem %s1405_s30, 2048 }
  0x56   : > { %v833_v43 = vld [vmem:[#allocation2 + $0x62] sm:$0xff]  ;;  %v834_v46 = vld [vmem:[#allocation2 + $0x6a] sm:$0xff]  ;;  %v835_v53 = vld [vmem:[#allocation2 + $0x7a] sm:$0xff] }
  0x57   : > { %v887_v44 = vld [vmem:[%s1962_s3 + $0x8] sm:$0x1]  ;;  %v886_v45 = vld [vmem:[%s1962_s3] sm:$0xff] }
  0x58   : > { %560 = vrot.lane.b32.xlu1 %v1700_v27, %s1498_s26  ;;  %552 = vrot.lane.b32.xlu0 %v535_v28, %s1498_s26  ;;  %v738_v48 = vld [vmem:[#allocation2 + $0x80] sm:$0xff] }
  0x59   : > { %1297 = vmatprep.subr.msk.mxu0 %vm913_vm2, %v887_v44  ;;  %1313 = vmatprep.subr.msk.mxu1 %vm913_vm2, %v887_v44  ;;  %v787_v50 = vld [vmem:[#allocation2 + $0x81] sm:$0xff] }
  0x5a   : > { %1298 = vmatpush3.msk.msra.mxu0 %vm913_vm2, %v887_v44  ;;  %1315 = vmatpush3.msk.msra.mxu1 %vm913_vm2, %v887_v44  ;;  %v836_v56 = vld [vmem:[#allocation2 + $0x82] sm:$0xff] }
  0x5b   : > { %1299 = vmatprep.subr.mxu0 %v886_v45  ;;  %1314 = vmatprep.subr.mxu1 %v886_v45 }
  0x5c   : > { %607 = vrot.lane.b32.xlu1 %v1679_v19, %s1499_s15  ;;  %599 = vrot.lane.b32.xlu0 %v583_v20, %s1499_s15 }
  0x5d   : > { %1300 = vmatpush3.msra.mxu0 %v886_v45  ;;  %1316 = vmatpush3.msra.mxu1 %v886_v45 }
  0x60   : > { %609 = vrot.lane.b32.xlu1 %v1681_v21, %s1499_s15  ;;  %601 = vrot.lane.b32.xlu0 %v584_v22, %s1499_s15 }
  0x64   : > { %656 = vrot.lane.b32.xlu1 %v1713_v31, %s1500_s18  ;;  %648 = vrot.lane.b32.xlu0 %v632_v32, %s1500_s18 }
  0x68   : > { %513 = vrot.lane.b32.xlu1 %v1713_v31, %s1497_s0  ;;  %505 = vrot.lane.b32.xlu0 %v632_v32, %s1497_s0 }
  0x6c   : > { %658 = vrot.lane.b32.xlu1 %v1721_v33, %s1500_s18  ;;  %650 = vrot.lane.b32.xlu0 %v633_v34, %s1500_s18 }
  0x70   : > { %705 = vrot.lane.b32.xlu1 %v1726_v35, %s1501_s29  ;;  %697 = vrot.lane.b32.xlu0 %v681_v36, %s1501_s29 }
  0x74   : > { %515 = vrot.lane.b32.xlu1 %v1721_v33, %s1497_s0  ;;  %507 = vrot.lane.b32.xlu0 %v633_v34, %s1497_s0  ;;  %s1286_s0 = sshll.u32 %s1476_s24, 3  ;;  %s1102_s24 = sshll.u32 %s1659_s27, 4  ;;  %s1899_s24 = int_to_ptr.vmem [resolvable:$true] %s1102_s24 }
  0x75   : > { %s1400_s17 = scalar_lea.vmem %s1899_s24, 1024  ;;  %p1407_p12 = scmp.lt.s32.totalorder %s1899_s24, %s1405_s30 }
  0x76   : > { %p1401_p9 = scmp.ne.s32.totalorder %s1899_s24, %s1400_s17  ;;  %p1408_p13 = scmp.lt.s32.totalorder %s1406_s9, %s1400_s17 }
  0x78   : > { %562 = vrot.lane.b32.xlu1 %v1726_v35, %s1498_s26  ;;  %554 = vrot.lane.b32.xlu0 %v681_v36, %s1498_s26  ;;  %p1402_p10 = pnand %p1401_p9, %p1593_p3  ;;  %p1409_p0 = por %p1408_p13, %p1407_p12 }
  0x7a   : > { %p1403_p11 = pneg %p1402_p10 }
  0x7c   : > { %707 = vrot.lane.b32.xlu1 %v1737_v37, %s1501_s29  ;;  %699 = vrot.lane.b32.xlu0 %v682_v38, %s1501_s29  ;;  %p1410_p1 = pnand %p1409_p0, %p1403_p11 }
  0x80   : > { %755 = vrot.lane.b32.xlu1 %v735_v39, %s1502_s14  ;;  %747 = vrot.lane.b32.xlu0 %v731_v25, %s1502_s14 }
  0x84   : > { %564 = vrot.lane.b32.xlu1 %v1737_v37, %s1498_s26  ;;  %556 = vrot.lane.b32.xlu0 %v682_v38, %s1498_s26  ;;  %s1280_s26 = sshll.u32 %s1480_s25, 5 }
  0x88   : > { %611 = vrot.lane.b32.xlu1 %v735_v39, %s1499_s15  ;;  %603 = vrot.lane.b32.xlu0 %v731_v25, %s1499_s15 }
  0x8c   : > { %757 = vrot.lane.b32.xlu1 %v736_v40, %s1502_s14  ;;  %749 = vrot.lane.b32.xlu0 %v732_v26, %s1502_s14 }
  0x90   : > { %804 = vrot.lane.b32.xlu1 %v784_v41, %s1503_s19  ;;  %796 = vrot.lane.b32.xlu0 %v1677_v18, %s1503_s19 }
  0x94   : > { %613 = vrot.lane.b32.xlu1 %v736_v40, %s1499_s15  ;;  %605 = vrot.lane.b32.xlu0 %v732_v26, %s1499_s15  ;;  %s1099_s15 = sadd.s32 %s1286_s0, %s1280_s26 }
  0x98   : > { %660 = vrot.lane.b32.xlu1 %v784_v41, %s1500_s18  ;;  %652 = vrot.lane.b32.xlu0 %v1677_v18, %s1500_s18 }
  0x9c   : > { %806 = vrot.lane.b32.xlu1 %v785_v42, %s1503_s19  ;;  %798 = vrot.lane.b32.xlu0 %v1675_v17, %s1503_s19 }
  0xa0   : > { %853 = vrot.lane.b32.xlu1 %v833_v43, %s1504_s8  ;;  %845 = vrot.lane.b32.xlu0 %v1693_v23, %s1504_s8 }
  0xa4   : > { %662 = vrot.lane.b32.xlu1 %v785_v42, %s1500_s18  ;;  %654 = vrot.lane.b32.xlu0 %v1675_v17, %s1500_s18  ;;  %s1281_s18 = sshll.u32 %s1099_s15, 7 }
  0xa8   : > { %709 = vrot.lane.b32.xlu1 %v833_v43, %s1501_s29  ;;  %701 = vrot.lane.b32.xlu0 %v1693_v23, %s1501_s29 }
  0xac   : > { %855 = vrot.lane.b32.xlu1 %v834_v46, %s1504_s8  ;;  %847 = vrot.lane.b32.xlu0 %v1700_v27, %s1504_s8 }
  0xb0   : > { %711 = vrot.lane.b32.xlu1 %v834_v46, %s1501_s29  ;;  %703 = vrot.lane.b32.xlu0 %v1700_v27, %s1501_s29 }
  0xb4   : > { %759 = vrot.lane.b32.xlu1 %v737_v47, %s1502_s14  ;;  %751 = vrot.lane.b32.xlu0 %v1679_v19, %s1502_s14 }
  0xb8   : > { %761 = vrot.lane.b32.xlu1 %v738_v48, %s1502_s14  ;;  %753 = vrot.lane.b32.xlu0 %v1681_v21, %s1502_s14  ;;  %s1897_s14 = scalar_lea.hbm %s1965_s6, %s1281_s18 }
  0xbc   : > { %808 = vrot.lane.b32.xlu1 %v786_v49, %s1503_s19  ;;  %800 = vrot.lane.b32.xlu0 %v1713_v31, %s1503_s19 }
  0xbe   : > { %v504_v51 = vpop.permute.xlu1 %503  ;;  %v502_v52 = vpop.permute.xlu0 %501 }
  0xbf   : > { %527 = vst.msk [vmem:[#allocation3 + $0x8] sm:$0xff] %vm525_vm3, %v504_v51  ;;  %526 = vst.msk [vmem:[#allocation3] sm:$0xff] %vm525_vm3, %v502_v52 }
  0xc0   : > { %810 = vrot.lane.b32.xlu1 %v787_v50, %s1503_s19  ;;  %802 = vrot.lane.b32.xlu0 %v1721_v33, %s1503_s19  ;;  %s1981_s19 = sand.u32 1, %s1468_s22  }
  0xc1   : > { %s1907_s16 = scalar_lea.sflag [#allocation5], %s1981_s19 }
  0xc2   : > { %v512_v54 = vpop.permute.xlu1 %511  ;;  %v510_v55 = vpop.permute.xlu0 %509 }
  0xc3   : > { %531 = vst.msk [vmem:[#allocation3 + $0x28] sm:$0xff] %vm525_vm3, %v512_v54  ;;  %530 = vst.msk [vmem:[#allocation3 + $0x20] sm:$0xff] %vm525_vm3, %v510_v55 }
  0xc4   : > { %857 = vrot.lane.b32.xlu1 %v835_v53, %s1504_s8  ;;  %849 = vrot.lane.b32.xlu0 %v1726_v35, %s1504_s8 }
  0xc6   : > { %v559_v57 = vpop.permute.xlu1 %558  ;;  %v551_v58 = vpop.permute.xlu0 %550 }
  0xc7   : > { %579 = vst.msk [vmem:[#allocation3 + $0x20] sm:$0xff] %vm574_vm4, %v559_v57  ;;  %575 = vst.msk [vmem:[#allocation3] sm:$0xff] %vm574_vm4, %v551_v58 }
  0xc8   : > { %859 = vrot.lane.b32.xlu1 %v836_v56, %s1504_s8  ;;  %851 = vrot.lane.b32.xlu0 %v1737_v37, %s1504_s8 }
  0xca   : > { %v561_v59 = vpop.permute.xlu1 %560  ;;  %v553_v60 = vpop.permute.xlu0 %552 }
  0xcb   : > { %580 = vst.msk [vmem:[#allocation3 + $0x28] sm:$0xff] %vm574_vm4, %v561_v59  ;;  %576 = vst.msk [vmem:[#allocation3 + $0x8] sm:$0xff] %vm574_vm4, %v553_v60 }
  0xce   : > { %v608_v61 = vpop.permute.xlu1 %607  ;;  %v600_v62 = vpop.permute.xlu0 %599 }
  0xcf   : > { %628 = vst.msk [vmem:[#allocation3 + $0x20] sm:$0xff] %vm623_vm5, %v608_v61  ;;  %624 = vst.msk [vmem:[#allocation3] sm:$0xff] %vm623_vm5, %v600_v62  ;;  %v1275_v61 = vld [vmem:[%s1963_s4] ss:$0 sm:$0xff] }
  0xd2   : > { %v610_v63 = vpop.permute.xlu1 %609  ;;  %v602_v0 = vpop.permute.xlu0 %601 }
  0xd3   : > { %629 = vst.msk [vmem:[#allocation3 + $0x28] sm:$0xff] %vm623_vm5, %v610_v63  ;;  %625 = vst.msk [vmem:[#allocation3 + $0x8] sm:$0xff] %vm623_vm5, %v602_v0  ;;  %v1276_v63 = vld [vmem:[%s1964_s5] ss:$0 sm:$0xff] }
  0xd6   : > { %v657_v1 = vpop.permute.xlu1 %656  ;;  %v649_v2 = vpop.permute.xlu0 %648 }
  0xd7   : > { %677 = vst.msk [vmem:[#allocation3 + $0x20] sm:$0xff] %vm672_vm6, %v657_v1  ;;  %673 = vst.msk [vmem:[#allocation3] sm:$0xff] %vm672_vm6, %v649_v2 }
  0xda   : > { %v514_v3 = vpop.permute.xlu1 %513  ;;  %v506_v4 = vpop.permute.xlu0 %505 }
  0xdb   : > { %532 = vst.msk [vmem:[#allocation3 + $0x30] sm:$0xff] %vm525_vm3, %v514_v3  ;;  %528 = vst.msk [vmem:[#allocation3 + $0x10] sm:$0xff] %vm525_vm3, %v506_v4 }
  0xde   : > { %v659_v5 = vpop.permute.xlu1 %658  ;;  %v651_v6 = vpop.permute.xlu0 %650 }
  0xdf   : > { %678 = vst.msk [vmem:[#allocation3 + $0x28] sm:$0xff] %vm672_vm6, %v659_v5  ;;  %674 = vst.msk [vmem:[#allocation3 + $0x8] sm:$0xff] %vm672_vm6, %v651_v6 }
  0xe2   : > { %v706_v7 = vpop.permute.xlu1 %705  ;;  %v698_v8 = vpop.permute.xlu0 %697 }
  0xe3   : > { %726 = vst.msk [vmem:[#allocation3 + $0x20] sm:$0xff] %vm721_vm7, %v706_v7  ;;  %722 = vst.msk [vmem:[#allocation3] sm:$0xff] %vm721_vm7, %v698_v8 }
  0xe6   : > { %v516_v9 = vpop.permute.xlu1 %515  ;;  %v508_v10 = vpop.permute.xlu0 %507 }
  0xe7   : > { %533 = vst.msk [vmem:[#allocation3 + $0x38] sm:$0xff] %vm525_vm3, %v516_v9  ;;  %529 = vst.msk [vmem:[#allocation3 + $0x18] sm:$0xff] %vm525_vm3, %v508_v10 }
  0xea   : > { %v563_v11 = vpop.permute.xlu1 %562  ;;  %v555_v12 = vpop.permute.xlu0 %554 }
  0xeb   : > { %581 = vst.msk [vmem:[#allocation3 + $0x30] sm:$0xff] %vm574_vm4, %v563_v11  ;;  %577 = vst.msk [vmem:[#allocation3 + $0x10] sm:$0xff] %vm574_vm4, %v555_v12 }
  0xee   : > { %v708_v13 = vpop.permute.xlu1 %707  ;;  %v700_v14 = vpop.permute.xlu0 %699 }
  0xef   : > { %727 = vst.msk [vmem:[#allocation3 + $0x28] sm:$0xff] %vm721_vm7, %v708_v13  ;;  %723 = vst.msk [vmem:[#allocation3 + $0x8] sm:$0xff] %vm721_vm7, %v700_v14 }
  0xf2   : > { %v756_v15 = vpop.permute.xlu1 %755  ;;  %v748_v16 = vpop.permute.xlu0 %747 }
  0xf3   : > { %776 = vst.msk [vmem:[#allocation3 + $0x20] sm:$0xff] %vm771_vm8, %v756_v15  ;;  %772 = vst.msk [vmem:[#allocation3] sm:$0xff] %vm771_vm8, %v748_v16 }
  0xf6   : > { %v565_v17 = vpop.permute.xlu1 %564  ;;  %v557_v18 = vpop.permute.xlu0 %556 }
  0xf7   : > { %582 = vst.msk [vmem:[#allocation3 + $0x38] sm:$0xff] %vm574_vm4, %v565_v17  ;;  %578 = vst.msk [vmem:[#allocation3 + $0x18] sm:$0xff] %vm574_vm4, %v557_v18 }
  0xfa   : > { %v612_v19 = vpop.permute.xlu1 %611  ;;  %v604_v20 = vpop.permute.xlu0 %603 }
  0xfb   : > { %630 = vst.msk [vmem:[#allocation3 + $0x30] sm:$0xff] %vm623_vm5, %v612_v19  ;;  %626 = vst.msk [vmem:[#allocation3 + $0x10] sm:$0xff] %vm623_vm5, %v604_v20 }
  0xfe   : > { %v758_v21 = vpop.permute.xlu1 %757  ;;  %v750_v22 = vpop.permute.xlu0 %749 }
  0xff   : > { %777 = vst.msk [vmem:[#allocation3 + $0x28] sm:$0xff] %vm771_vm8, %v758_v21  ;;  %773 = vst.msk [vmem:[#allocation3 + $0x8] sm:$0xff] %vm771_vm8, %v750_v22 }
 0x102   : > { %v805_v23 = vpop.permute.xlu1 %804  ;;  %v797_v24 = vpop.permute.xlu0 %796 }
 0x103   : > { %825 = vst.msk [vmem:[#allocation3 + $0x20] sm:$0xff] %vm820_vm9, %v805_v23  ;;  %821 = vst.msk [vmem:[#allocation3] sm:$0xff] %vm820_vm9, %v797_v24 }
 0x106   : > { %v614_v25 = vpop.permute.xlu1 %613  ;;  %v606_v26 = vpop.permute.xlu0 %605 }
 0x107   : > { %631 = vst.msk [vmem:[#allocation3 + $0x38] sm:$0xff] %vm623_vm5, %v614_v25  ;;  %627 = vst.msk [vmem:[#allocation3 + $0x18] sm:$0xff] %vm623_vm5, %v606_v26 }
 0x10a   : > { %v661_v27 = vpop.permute.xlu1 %660  ;;  %v653_v28 = vpop.permute.xlu0 %652 }
 0x10b   : > { %679 = vst.msk [vmem:[#allocation3 + $0x30] sm:$0xff] %vm672_vm6, %v661_v27  ;;  %675 = vst.msk [vmem:[#allocation3 + $0x10] sm:$0xff] %vm672_vm6, %v653_v28 }
 0x10e   : > { %v807_v29 = vpop.permute.xlu1 %806  ;;  %v799_v30 = vpop.permute.xlu0 %798 }
 0x10f   : > { %826 = vst.msk [vmem:[#allocation3 + $0x28] sm:$0xff] %vm820_vm9, %v807_v29  ;;  %822 = vst.msk [vmem:[#allocation3 + $0x8] sm:$0xff] %vm820_vm9, %v799_v30 }
 0x112   : > { %v854_v31 = vpop.permute.xlu1 %853  ;;  %v846_v32 = vpop.permute.xlu0 %845 }
 0x113   : > { %874 = vst.msk [vmem:[#allocation3 + $0x20] sm:$0xff] %vm869_vm10, %v854_v31  ;;  %870 = vst.msk [vmem:[#allocation3] sm:$0xff] %vm869_vm10, %v846_v32 }
 0x116   : > { %v663_v33 = vpop.permute.xlu1 %662  ;;  %v655_v34 = vpop.permute.xlu0 %654 }
 0x117   : > { %680 = vst.msk [vmem:[#allocation3 + $0x38] sm:$0xff] %vm672_vm6, %v663_v33  ;;  %676 = vst.msk [vmem:[#allocation3 + $0x18] sm:$0xff] %vm672_vm6, %v655_v34 }
 0x11a   : > { %v710_v35 = vpop.permute.xlu1 %709  ;;  %v702_v36 = vpop.permute.xlu0 %701  ;;  %v878_v37 = vld [vmem:[#allocation3] sm:$0xff] }
 0x11b   : > { %v882_v38 = vld [vmem:[#allocation3 + $0x20] sm:$0xff]  ;;  %728 = vst.msk [vmem:[#allocation3 + $0x30] sm:$0xff] %vm721_vm7, %v710_v35  ;;  %724 = vst.msk [vmem:[#allocation3 + $0x10] sm:$0xff] %vm721_vm7, %v702_v36  ;;  %1301 = vmatprep.mubr.msk.f32.mxu0 %vm888_vm11, %v878_v37 }
 0x11c   : > { %1307 = vmatprep.mubr.msk.f32.mxu1 %vm888_vm11, %v882_v38 }
 0x11e   : > { %v856_v39 = vpop.permute.xlu1 %855  ;;  %v848_v40 = vpop.permute.xlu0 %847 }
 0x11f   : > { %875 = vst.msk [vmem:[#allocation3 + $0x28] sm:$0xff] %vm869_vm10, %v856_v39  ;;  %871 = vst.msk [vmem:[#allocation3 + $0x8] sm:$0xff] %vm869_vm10, %v848_v40 }
 0x122   : > { %v712_v41 = vpop.permute.xlu1 %711  ;;  %v704_v42 = vpop.permute.xlu0 %703 }
 0x123   : > { %729 = vst.msk [vmem:[#allocation3 + $0x38] sm:$0xff] %vm721_vm7, %v712_v41  ;;  %725 = vst.msk [vmem:[#allocation3 + $0x18] sm:$0xff] %vm721_vm7, %v704_v42 }
 0x126   : > { %v760_v43 = vpop.permute.xlu1 %759  ;;  %v752_v44 = vpop.permute.xlu0 %751  ;;  %v879_v45 = vld [vmem:[#allocation3 + $0x8] sm:$0xff] }
 0x127   : > { %v883_v46 = vld [vmem:[#allocation3 + $0x28] sm:$0xff]  ;;  %778 = vst.msk [vmem:[#allocation3 + $0x30] sm:$0xff] %vm771_vm8, %v760_v43  ;;  %774 = vst.msk [vmem:[#allocation3 + $0x10] sm:$0xff] %vm771_vm8, %v752_v44  ;;  %1302 = vmatmul.mubr.msk.f32.vlgmr.msra.gmra.mxu0 %vm888_vm11, %v879_v45 }
 0x128   : > { %1308 = vmatmul.mubr.msk.f32.vlgmr.msra.gmra.mxu1 %vm888_vm11, %v883_v46 }
 0x12a   : > { %v762_v47 = vpop.permute.xlu1 %761  ;;  %v754_v48 = vpop.permute.xlu0 %753 }
 0x12b   : > { %779 = vst.msk [vmem:[#allocation3 + $0x38] sm:$0xff] %vm771_vm8, %v762_v47  ;;  %775 = vst.msk [vmem:[#allocation3 + $0x18] sm:$0xff] %vm771_vm8, %v754_v48 }
 0x12e   : > { %v809_v49 = vpop.permute.xlu1 %808  ;;  %v801_v50 = vpop.permute.xlu0 %800 }
 0x12f   : > { %827 = vst.msk [vmem:[#allocation3 + $0x30] sm:$0xff] %vm820_vm9, %v809_v49  ;;  %823 = vst.msk [vmem:[#allocation3 + $0x10] sm:$0xff] %vm820_vm9, %v801_v50 }
 0x132   : > { %v811_v51 = vpop.permute.xlu1 %810  ;;  %v803_v52 = vpop.permute.xlu0 %802 }
 0x133   : > { %828 = vst.msk [vmem:[#allocation3 + $0x38] sm:$0xff] %vm820_vm9, %v811_v51  ;;  %824 = vst.msk [vmem:[#allocation3 + $0x18] sm:$0xff] %vm820_vm9, %v803_v52 }
 0x136   : > { %v858_v53 = vpop.permute.xlu1 %857  ;;  %v850_v54 = vpop.permute.xlu0 %849 }
 0x137   : > { %876 = vst.msk [vmem:[#allocation3 + $0x30] sm:$0xff] %vm869_vm10, %v858_v53  ;;  %872 = vst.msk [vmem:[#allocation3 + $0x10] sm:$0xff] %vm869_vm10, %v850_v54 }
 0x13a   : > { %v860_v55 = vpop.permute.xlu1 %859  ;;  %v852_v56 = vpop.permute.xlu0 %851 }
 0x13b   : > { %877 = vst.msk [vmem:[#allocation3 + $0x38] sm:$0xff] %vm869_vm10, %v860_v55  ;;  %873 = vst.msk [vmem:[#allocation3 + $0x18] sm:$0xff] %vm869_vm10, %v852_v56 }
 0x13e   : > { %v880_v57 = vld [vmem:[#allocation3 + $0x10] sm:$0xff] }
 0x13f   : > { %v884_v58 = vld [vmem:[#allocation3 + $0x30] sm:$0xff]  ;;  %1304 = vmatprep.mubr.msk.f32.mxu0 %vm888_vm11, %v880_v57 }
 0x140   : > { %1310 = vmatprep.mubr.msk.f32.mxu1 %vm888_vm11, %v884_v58 }
 0x142   : > { %v881_v59 = vld [vmem:[#allocation3 + $0x18] sm:$0xff] }
 0x143   : > { %v885_v60 = vld [vmem:[#allocation3 + $0x38] sm:$0xff]  ;;  %1305 = vmatmul.mubr.msk.f32.gmra.mxu0 %vm888_vm11, %v881_v59 }
 0x144   : > { %1311 = vmatmul.mubr.msk.f32.gmra.mxu1 %vm888_vm11, %v885_v60 }
 0x1e7   : > { %v1303_v62 = vpop.f32.mrf.mxu0 }
 0x1e8   : > { %v1309_v0 = vpop.f32.mrf.mxu1  ;;  %v1030_v1 = vmul.f32 %v1303_v62, %v1275_v61 }
 0x1e9   : > { %v1034_v2 = vmul.f32 %v1309_v0, %v1275_v61  ;;  %v983_v3 = vpop.f32.mrf.mxu0 }
 0x1ea   : > { %v1003_v4 = vpop.f32.mrf.mxu1  ;;  %v1045_v5 = vadd.f32 %v1276_v63, %v1030_v1  ;;  %v1029_v7 = vmul.f32 %v1275_v61, %v983_v3 }
 0x1eb   : > { %v1049_v6 = vadd.f32 %v1276_v63, %v1034_v2  ;;  %v1033_v8 = vmul.f32 %v1275_v61, %v1003_v4 }
 0x1ec   : > { %vm1053_vm13 = vcmp.ge.f32.partialorder %v1045_v5, 0.0  ;;  %v1061_v9 = vmul.f32 0.01, %v1045_v5  ;;  %v1044_v11 = vadd.f32 %v1276_v63, %v1029_v7 }
 0x1ed   : > { %vm1057_vm14 = vcmp.ge.f32.partialorder %v1049_v6, 0.0  ;;  %v1065_v10 = vmul.f32 0.01, %v1049_v6  ;;  %v1048_v12 = vadd.f32 %v1276_v63, %v1033_v8 }
 0x1ee   : > { %v1069_v13 = vsel %vm1053_vm13, %v1045_v5, %v1061_v9  ;;  %vm1052_vm15 = vcmp.ge.f32.partialorder %v1044_v11, 0.0  ;;  %v1060_v15 = vmul.f32 0.01, %v1044_v11 }
 0x1ef   : > { %v1073_v14 = vsel %vm1057_vm14, %v1049_v6, %v1065_v10  ;;  %1078 = vst.msk [vmem:[%s1659_s27 + $0x8] sm:$0xff] %vm1076_vm12, %v1069_v13  ;;  %vm1056_vm0 = vcmp.ge.f32.partialorder %v1048_v12, 0.0  ;;  %v1064_v16 = vmul.f32 0.01, %v1048_v12 }
 0x1f0   : > { %1082 = vst.msk [vmem:[%s1659_s27 + $0x28] sm:$0xff] %vm1076_vm12, %v1073_v14  ;;  %v1068_v17 = vsel %vm1052_vm15, %v1044_v11, %v1060_v15 }
 0x1f1   : > { %v1072_v18 = vsel %vm1056_vm0, %v1048_v12, %v1064_v16  ;;  %1077 = vst.msk [vmem:[%s1659_s27] sm:$0xff] %vm1076_vm12, %v1068_v17 }
 0x1f2   : > { %1081 = vst.msk [vmem:[%s1659_s27 + $0x20] sm:$0xff] %vm1076_vm12, %v1072_v18 }
 0x203   : > { %v1306_v19 = vpop.f32.mrf.mxu0 }
 0x204   : > { %v1312_v20 = vpop.f32.mrf.mxu1  ;;  %v1032_v21 = vmul.f32 %v1306_v19, %v1275_v61 }
 0x205   : > { %v1036_v22 = vmul.f32 %v1312_v20, %v1275_v61  ;;  %v993_v23 = vpop.f32.mrf.mxu0 }
 0x206   : > { %v1013_v24 = vpop.f32.mrf.mxu1  ;;  %v1047_v25 = vadd.f32 %v1276_v63, %v1032_v21  ;;  %v1031_v27 = vmul.f32 %v1275_v61, %v993_v23 }
 0x207   : > { %v1051_v26 = vadd.f32 %v1276_v63, %v1036_v22  ;;  %v1035_v28 = vmul.f32 %v1275_v61, %v1013_v24 }
 0x208   : > { %vm1055_vm1 = vcmp.ge.f32.partialorder %v1047_v25, 0.0  ;;  %v1063_v29 = vmul.f32 0.01, %v1047_v25  ;;  %v1046_v31 = vadd.f32 %v1276_v63, %v1031_v27 }
 0x209   : > { %vm1059_vm2 = vcmp.ge.f32.partialorder %v1051_v26, 0.0  ;;  %v1067_v30 = vmul.f32 0.01, %v1051_v26  ;;  %v1050_v32 = vadd.f32 %v1276_v63, %v1035_v28 }
 0x20a   : > { %v1071_v33 = vsel %vm1055_vm1, %v1047_v25, %v1063_v29  ;;  %vm1054_vm3 = vcmp.ge.f32.partialorder %v1046_v31, 0.0  ;;  %v1062_v35 = vmul.f32 0.01, %v1046_v31 }
 0x20b   : > { %v1075_v34 = vsel %vm1059_vm2, %v1051_v26, %v1067_v30  ;;  %1080 = vst.msk [vmem:[%s1659_s27 + $0x18] sm:$0xff] %vm1076_vm12, %v1071_v33  ;;  %vm1058_vm4 = vcmp.ge.f32.partialorder %v1050_v32, 0.0  ;;  %v1066_v36 = vmul.f32 0.01, %v1050_v32 }
 0x20c   : > { %1084 = vst.msk [vmem:[%s1659_s27 + $0x38] sm:$0xff] %vm1076_vm12, %v1075_v34  ;;  %v1070_v37 = vsel %vm1054_vm3, %v1046_v31, %v1062_v35 }
 0x20d   : > { %v1074_v38 = vsel %vm1058_vm4, %v1050_v32, %v1066_v36  ;;  %1079 = vst.msk [vmem:[%s1659_s27 + $0x10] sm:$0xff] %vm1076_vm12, %v1070_v37 }
 0x20e   : > { %1083 = vst.msk [vmem:[%s1659_s27 + $0x30] sm:$0xff] %vm1076_vm12, %v1074_v38 }
 0x20f   : > { %1413 = shalt.err (!%p1410_p1)
}
 0x210   : > { %s1414_s27 = scalar_lea.hbm %s1897_s14, 1024  ;;  %s1418_s7 = scalar_lea.hbm %s1965_s6, 8192 }
 0x211   : > { %p1415_p2 = scmp.ne.s32.totalorder %s1897_s14, %s1414_s27  ;;  %p1419_p6 = scmp.lt.s32.totalorder %s1897_s14, %s1965_s6 }
 0x212   : > { %p1420_p7 = scmp.lt.s32.totalorder %s1418_s7, %s1414_s27 }
 0x213   : > { %p1416_p4 = pnand %p1415_p2, %p1593_p3 }
 0x214   : > { %p1421_p9 = por %p1420_p7, %p1419_p6 }
 0x215   : > { %p1417_p5 = pneg %p1416_p4 }
 0x217   : > { %p1422_p10 = pnand %p1421_p9, %p1417_p5 }
 0x219   : > { %1425 = shalt.err (!%p1422_p10)
}
 0x21a   : > { %s1506_s15 = smov 128  }
 0x21b   : > { %1317 = dma.vmem_to_hbm [thread:$0]  (%p1593_p3), %s1899_s24, 1024, %s1897_s14, %s1907_s16, %s1506_s15, %s1506_s15, %s1504_s8  }
 0x21c PF: > { %p1323_p11 = scmp.ge.s32.totalorder %s1492_s28, 2  ;;  %s1117_s18 = sand.u32 1, %s1464_s21  }
 0x21d   : > { %s1118_s25 = scalar_lea.sflag [#allocation5], %s1117_s18 }
 0x21e   : > { %p1320_p12 = pnand %p1323_p11, %p1602_p8 }
 0x220   : > { %p1321_p13 = pneg %p1320_p12 }
 0x222   : > { %1459 = dma.done.wait (%p1321_p13), %s1118_s25, 1024  }
 0x223   : > { %1461 = vsyncadd (%p1321_p13), %s1118_s25, 4294966272  ;;  %s19_s28 = sadd.s32 1, %s1492_s28   ;;  %s1982_s10 = sld [smem:[#allocation11_spill]] }
 0x224   : > { %p16_p0 = scmp.ge.s32.totalorder %s19_s28, 10   ;;  %s1983_s24 = sld [smem:[#allocation7_spill]] }
 0x225   : > { %s1984_s25 = sld [smem:[#allocation8_spill]]  ;;  %s1987_s21 = smov %s1468_s22 }
 0x226   : > { %s1985_s26 = sld [smem:[#allocation9_spill]]  ;;  %s1988_s22 = smov %s1472_s23 }
 0x227   : > { %s1986_s27 = sld [smem:[#allocation10_spill]]  ;;  %18 = sbr.rel (!%p16_p0) target bundleno = 7 (0x7), region = 105 }
 0x229   : > { %s1989_s23 = smov %s1982_s10 }
 0x22c   :  { %1123 = vsyncpa [#allocation5], 1 }
 0x22d   :  { %1125 = vsyncpa [#allocation5 + $0x1], 1 }

</bundles_post_ra>
